<compile_context>
chip_gen: v7x
topology: tpu7x:2x2x1
jax: 0.10.0
libtpu: 0.0.40
codegen_flags: <defaults>
</compile_context>

<pallas_src>
import functools

import jax
import jax.numpy as jnp
from jax.experimental import pallas as pl
from jax.experimental.pallas import tpu as pltpu


def _round_up(a, b):
    return (a + b - 1) // b * b


def _c_eff(head_dim, heads):
    """Smallest per-head width c >= head_dim such that heads*c is a multiple of 128."""
    c = max(head_dim, 1)
    while (heads * c) % 128 != 0:
        c += 1
    return c


def _elementwise_dtype():
    """bf16 elementwise softmax chain on v6e/v7x; f32 on v5 and older (no bf16 VPU/EUP)."""
    try:
        kind = jax.devices()[0].device_kind.lower()
    except Exception:
        return jnp.float32
    for old in ("v2", "v3", "v4", "v5"):
        if old in kind:
            return jnp.float32
    return jnp.bfloat16


# --------------------------------------------------------------------------
# Kernel 1: feature projection + per-node attention scores (one MXU pass each).
# --------------------------------------------------------------------------
def _proj_kernel(x_ref, w_ref, wsc_ref, xp_ref, sc_ref):
    x = x_ref[...].astype(jnp.bfloat16)                       # [TM, F_in]
    xp = jnp.dot(x, w_ref[...], preferred_element_type=jnp.float32)   # [TM, hc_eff]
    xp_ref[...] = xp.astype(jnp.bfloat16)                     # lane-dense bf16 store
    sc_ref[...] = jnp.dot(x, wsc_ref[...],
                          preferred_element_type=jnp.float32)  # [TM, 2H]


# --------------------------------------------------------------------------
# Kernel 2: online-softmax attention + aggregation + bias + activation.
# grid = (dst tiles, src tiles); src axis is the reduction ("arbitrary").
# --------------------------------------------------------------------------
def _attn_kernel(xp_ref, adj_ref, asrc_t_ref, adst_ref, bias_ref, out_ref,
                 m_ref, l_ref, acc_ref, *,
                 heads, c_eff, out_dim, concat, activation, ew_dtype):
    j = pl.program_id(1)
    nj = pl.num_programs(1)

    @pl.when(j == 0)
    def _():
        m_ref[...] = jnp.full_like(m_ref, -1e30)
        l_ref[...] = jnp.zeros_like(l_ref)
        acc_ref[...] = jnp.zeros_like(acc_ref)

    # Additive mask, hoisted across heads: 0 for edges, -3e38 for non-edges.
    adj_f = adj_ref[...].astype(jnp.float32)                  # int8 {0,1} -> f32
    madd = ((adj_f - 1.0) * 3e38).astype(ew_dtype)            # [TM, TS]

    xp = xp_ref[...]                                          # [TS, hc_eff] bf16
    adst = adst_ref[...]                                      # [TM, H] f32

    for h in range(heads):
        a_d = adst[:, h:h + 1].astype(ew_dtype)               # [TM, 1]
        a_s = asrc_t_ref[h:h + 1, :].astype(ew_dtype)         # [1, TS]
        logit = a_d + a_s                                     # [TM, TS]
        logit = jnp.maximum(logit, 0.2 * logit)               # LeakyReLU(0.2)
        masked = logit + madd                                 # non-edges -> ~-3e38

        # Softmax statistics kept in f32.
        blk_max = jnp.max(masked.astype(jnp.float32), axis=1, keepdims=True)
        m_old = m_ref[:, h:h + 1]
        m_new = jnp.maximum(m_old, blk_max)                   # [TM, 1] f32
        alpha = jnp.exp(m_old - m_new)                        # rescale of old stats

        p = jnp.exp(masked - m_new.astype(ew_dtype))          # [TM, TS] ew_dtype
        psum = jnp.sum(p.astype(jnp.float32), axis=1, keepdims=True)
        l_ref[:, h:h + 1] = alpha * l_ref[:, h:h + 1] + psum

        part = jnp.dot(p.astype(jnp.bfloat16), xp[:, h * c_eff:(h + 1) * c_eff],
                       preferred_element_type=jnp.float32)    # [TM, c_eff]
        acc_ref[:, h * c_eff:(h + 1) * c_eff] = (
            alpha * acc_ref[:, h * c_eff:(h + 1) * c_eff] + part)
        m_ref[:, h:h + 1] = m_new

    @pl.when(j == nj - 1)
    def _():
        if concat:
            for h in range(heads):
                inv = pl.reciprocal(jnp.maximum(l_ref[:, h:h + 1], 1e-20), approx=True)
                acc_ref[:, h * c_eff:(h + 1) * c_eff] = (
                    acc_ref[:, h * c_eff:(h + 1) * c_eff] * inv)
            out = acc_ref[...] + bias_ref[...]                # [TM, hc_eff]
        else:
            out = jnp.zeros((acc_ref.shape[0], c_eff), jnp.float32)
            for h in range(heads):
                inv = pl.reciprocal(jnp.maximum(l_ref[:, h:h + 1], 1e-20), approx=True)
                out = out + acc_ref[:, h * c_eff:(h + 1) * c_eff] * inv
            out = out * (1.0 / heads) + bias_ref[...]         # [TM, c_eff]

        if activation == "elu":
            out = jnp.where(out > 0, out, jnp.exp(jnp.minimum(out, 0.0)) - 1.0)
        elif activation == "log_softmax":
            col = jax.lax.broadcasted_iota(jnp.int32, out.shape, 1)
            valid = col < out_dim                             # only real classes
            z = jnp.where(valid, out, -1e30)
            mx = jnp.max(z, axis=1, keepdims=True)
            z = z - mx
            ez = jnp.where(valid, jnp.exp(z), 0.0)
            lse = jnp.log(jnp.sum(ez, axis=1, keepdims=True))
            out = jnp.where(valid, z - lse, 0.0)

        out_ref[...] = out                                    # single lane-dense store


# --------------------------------------------------------------------------
# Layer wrapper.
# --------------------------------------------------------------------------
def gat_layer(x_pad, adj_i8, w_eff, w_sc, bias_eff, *, heads, head_dim, c_eff,
              concat, activation, tm, ts, ew_dtype):
    n_pad, f_in = x_pad.shape
    hc_eff = heads * c_eff
    out_pad = hc_eff if concat else c_eff
    out_dim = heads * head_dim if concat else head_dim

    # ---- projection + fused attention-score matmuls ----
    xp, scores = pl.pallas_call(
        _proj_kernel,
        grid=(n_pad // tm,),
        in_specs=[pl.BlockSpec((tm, f_in), lambda i: (i, 0)),
                  pl.BlockSpec((f_in, hc_eff), lambda i: (0, 0)),
                  pl.BlockSpec((f_in, 2 * heads), lambda i: (0, 0))],
        out_specs=(pl.BlockSpec((tm, hc_eff), lambda i: (i, 0)),
                   pl.BlockSpec((tm, 2 * heads), lambda i: (i, 0))),
        out_shape=(jax.ShapeDtypeStruct((n_pad, hc_eff), jnp.bfloat16),
                   jax.ShapeDtypeStruct((n_pad, 2 * heads), jnp.float32)),
        compiler_params=pltpu.CompilerParams(dimension_semantics=("parallel",)),
    )(x_pad, w_eff, w_sc)

    a_src_t = scores[:, :heads].T          # [H, N_pad]  (tiny wrapper transpose)
    a_dst = scores[:, heads:]              # [N_pad, H]

    # ---- online-softmax attention + aggregation ----
    kernel = functools.partial(_attn_kernel, heads=heads, c_eff=c_eff,
                               out_dim=out_dim, concat=concat,
                               activation=activation, ew_dtype=ew_dtype)
    out = pl.pallas_call(
        kernel,
        grid=(n_pad // tm, n_pad // ts),
        in_specs=[pl.BlockSpec((ts, hc_eff), lambda i, j: (j, 0)),    # xp src block
                  pl.BlockSpec((tm, ts), lambda i, j: (i, j)),        # adj int8 block
                  pl.BlockSpec((heads, ts), lambda i, j: (0, j)),     # a_src^T block
                  pl.BlockSpec((tm, heads), lambda i, j: (i, 0)),     # a_dst tile
                  pl.BlockSpec((1, out_pad), lambda i, j: (0, 0))],   # bias
        out_specs=pl.BlockSpec((tm, out_pad), lambda i, j: (i, 0)),
        out_shape=jax.ShapeDtypeStruct((n_pad, out_pad), jnp.float32),
        scratch_shapes=[pltpu.VMEM((tm, heads), jnp.float32),         # running max
                        pltpu.VMEM((tm, heads), jnp.float32),         # running sum
                        pltpu.VMEM((tm, hc_eff), jnp.float32)],       # accumulator
        compiler_params=pltpu.CompilerParams(
            dimension_semantics=("parallel", "arbitrary")),
    )(xp, adj_i8, a_src_t, a_dst, bias_eff)

    return out


# --------------------------------------------------------------------------
# Parameter preparation (lane-padded "effective" weights).
# --------------------------------------------------------------------------
def _prepare_gat_params(w, att_src, att_dst, bias, *, heads, head_dim, c_eff, concat):
    f_in = w.shape[0]
    hc_eff = heads * c_eff
    cols = (jnp.arange(heads)[:, None] * c_eff +
            jnp.arange(head_dim)[None, :]).reshape(-1)        # real column positions
    w_eff = jnp.zeros((f_in, hc_eff), jnp.float32).at[:, cols].set(w)

    eye = jnp.eye(heads, dtype=jnp.float32)
    bd_src = (att_src[:, :, None] * eye[:, None, :]).reshape(heads * head_dim, heads)
    bd_dst = (att_dst[:, :, None] * eye[:, None, :]).reshape(heads * head_dim, heads)
    att_bd = jnp.concatenate([bd_src, bd_dst], axis=1)        # [H*C, 2H]
    w_sc = w @ att_bd                                         # fused score weights

    out_pad = hc_eff if concat else c_eff
    if concat:
        bias_eff = jnp.zeros((1, out_pad), jnp.float32).at[0, cols].set(bias)
    else:
        bias_eff = jnp.zeros((1, out_pad), jnp.float32).at[0, :head_dim].set(bias)
    return w_eff.astype(jnp.bfloat16), w_sc.astype(jnp.bfloat16), bias_eff, cols


# --------------------------------------------------------------------------
# Model init / forward.
# --------------------------------------------------------------------------
def init_params(key, in_channels, out_channels, hidden=8, heads=8):
    ks = jax.random.split(key, 6)

    def glorot(k, shape):
        fan_in, fan_out = shape[-2], shape[-1]
        scale = jnp.sqrt(6.0 / (fan_in + fan_out))
        return jax.random.uniform(k, shape, jnp.float32, -scale, scale)

    return {
        # conv1: GATConv(in_channels, 8, heads=8)
        "w1": glorot(ks[0], (in_channels, heads * hidden)),
        "att_src1": glorot(ks[1], (heads, hidden)),
        "att_dst1": glorot(ks[2], (heads, hidden)),
        "b1": jnp.zeros((heads * hidden,), jnp.float32),
        # conv2: GATConv(64, out_channels, heads=1, concat=False)
        "w2": glorot(ks[3], (heads * hidden, out_channels)),
        "att_src2": glorot(ks[4], (1, out_channels)),
        "att_dst2": glorot(ks[5], (1, out_channels)),
        "b2": jnp.zeros((out_channels,), jnp.float32),
    }


def topogat_forward(params, x, topo, adj, out_channels, hidden=8, heads=8):
    # Concatenate topological features (glue in JAX).  Dropout = identity (eval).
    h = jnp.concatenate([x, topo], axis=1).astype(jnp.float32)
    n = h.shape[0]

    n_pad = _round_up(max(n, 128), 128)
    tm = 128
    ts = 512 if n_pad % 512 == 0 else (256 if n_pad % 256 == 0 else 128)
    ew_dtype = _elementwise_dtype()

    # Node padding; padded rows get a self-loop so they stay well-conditioned.
    h = jnp.pad(h, ((0, n_pad - n), (0, 0)))
    adj_i8 = jnp.zeros((n_pad, n_pad), jnp.int8)
    adj_i8 = adj_i8.at[:n, :n].set((adj > 0).astype(jnp.int8))
    if n_pad > n:
        pad_idx = jnp.arange(n, n_pad)
        adj_i8 = adj_i8.at[pad_idx, pad_idx].set(1)

    # ---- layer 1: GATConv(in, 8, heads=8, concat=True) + ELU ----
    c1 = _c_eff(hidden, heads)                       # 16  -> hc_eff = 128
    w1_eff, w1_sc, b1_eff, cols1 = _prepare_gat_params(
        params["w1"], params["att_src1"], params["att_dst1"], params["b1"],
        heads=heads, head_dim=hidden, c_eff=c1, concat=True)
    h1 = gat_layer(h, adj_i8, w1_eff, w1_sc, b1_eff, heads=heads, head_dim=hidden,
                   c_eff=c1, concat=True, activation="elu",
                   tm=tm, ts=ts, ew_dtype=ew_dtype)  # [n_pad, 128] f32 (lane-padded)

    # ---- layer 2: GATConv(64, out, heads=1, concat=False) + log_softmax ----
    c2 = _c_eff(out_channels, 1)                     # 128
    # Row-expand W2 into layer 1's padded column layout (padded rows are zero).
    w2_in = jnp.zeros((heads * c1, params["w2"].shape[1]), jnp.float32)
    w2_in = w2_in.at[cols1, :].set(params["w2"])
    w2_eff, w2_sc, b2_eff, _ = _prepare_gat_params(
        w2_in, params["att_src2"], params["att_dst2"], params["b2"],
        heads=1, head_dim=out_channels, c_eff=c2, concat=False)
    out = gat_layer(h1, adj_i8, w2_eff, w2_sc, b2_eff, heads=1,
                    head_dim=out_channels, c_eff=c2, concat=False,
                    activation="log_softmax", tm=tm, ts=ts, ew_dtype=ew_dtype)

    return out[:n, :out_channels]


def build_dense_adj(edge_index, num_nodes):
    """edge_index: [2, E] with row0=src, row1=dst. Returns [N_dst, N_src] mask
    with self-loops added (PyG GATConv default)."""
    adj = jnp.zeros((num_nodes, num_nodes), jnp.float32)
    adj = adj.at[edge_index[1], edge_index[0]].set(1.0)
    adj = adj.at[jnp.arange(num_nodes), jnp.arange(num_nodes)].set(1.0)
    return adj


if __name__ == "__main__":
    N = 16          # nodes
    F_IN = 8        # raw node features
    TOPO_DIM = 8    # topological features
    IN_CHANNELS = F_IN + TOPO_DIM
    OUT_CHANNELS = 4

    key = jax.random.PRNGKey(0)
    kx, kt, kp = jax.random.split(key, 3)
    x = jax.random.normal(kx, (N, F_IN), jnp.float32)
    topo = jax.random.normal(kt, (N, TOPO_DIM), jnp.float32)

    # Deterministic small graph: bidirectional ring + a few chords.
    src, dst = [], []
    for i in range(N):
        src += [i, (i + 1) % N, i, (i + 5) % N]
        dst += [(i + 1) % N, i, (i + 5) % N, i]
    edge_index = jnp.array([src, dst], dtype=jnp.int32)
    adj = build_dense_adj(edge_index, N)

    params = init_params(kp, IN_CHANNELS, OUT_CHANNELS)

    out = topogat_forward(params, x, topo, adj, OUT_CHANNELS)
    out = jax.block_until_ready(out)

    assert out.shape == (N, OUT_CHANNELS), out.shape
    assert bool(jnp.all(jnp.isfinite(out)))
    # log_softmax rows should exponentiate-sum to ~1
    row_sums = jnp.sum(jnp.exp(out), axis=1)
    assert bool(jnp.all(jnp.abs(row_sums - 1.0) < 1e-3))
    print("KERNEL_OK")
</pallas_src>

<mosaic_0001>
module attributes {stable_mosaic.version = 11 : i64} {
  func.func @_proj_kernel(%arg0: i32, %arg1: memref<128x16xf32, #tpu.memory_space<vmem>>, %arg2: memref<16x128xbf16, #tpu.memory_space<vmem>>, %arg3: memref<16x16xbf16, #tpu.memory_space<vmem>>, %arg4: memref<128x128xbf16, #tpu.memory_space<vmem>>, %arg5: memref<128x16xf32, #tpu.memory_space<vmem>>) attributes {dimension_semantics = [#tpu.dimension_semantics<parallel>], iteration_bounds = array<i64: 1>, scalar_prefetch = 0 : i64, scratch_operands = 0 : i64, tpu.core_type = #tpu.core_type<tc>, window_params = [{transform_indices = @transform_0, window_bounds = array<i64: 128, 16>}, {pipeline_mode = #tpu.pipeline_mode<synchronous>, transform_indices = @transform_1, window_bounds = array<i64: 16, 128>}, {pipeline_mode = #tpu.pipeline_mode<synchronous>, transform_indices = @transform_2, window_bounds = array<i64: 16, 16>}, {transform_indices = @transform_3, window_bounds = array<i64: 128, 128>}, {transform_indices = @transform_4, window_bounds = array<i64: 128, 16>}]} {
    %c0 = arith.constant 0 : index
    %c0_0 = arith.constant 0 : index
    %0 = vector.load %arg1[%c0, %c0_0] : memref<128x16xf32, #tpu.memory_space<vmem>>, vector<128x16xf32>
    %1 = arith.truncf %0 : vector<128x16xf32> to vector<128x16xbf16>
    %c0_1 = arith.constant 0 : index
    %c0_2 = arith.constant 0 : index
    %2 = vector.load %arg2[%c0_1, %c0_2] : memref<16x128xbf16, #tpu.memory_space<vmem>>, vector<16x128xbf16>
    %cst = arith.constant dense<0.000000e+00> : vector<128x128xf32>
    %3 = tpu.matmul %1, %2, %cst {dimension_numbers = #tpu.dot_dimension_numbers<[1], [0], [0], [1], [0, 0, 1, 1], [], []>} : vector<128x16xbf16>, vector<16x128xbf16>, vector<128x128xf32> -> vector<128x128xf32>
    %4 = arith.truncf %3 : vector<128x128xf32> to vector<128x128xbf16>
    %c0_3 = arith.constant 0 : index
    %c0_4 = arith.constant 0 : index
    %5 = vector.load %arg4[%c0_3, %c0_4] : memref<128x128xbf16, #tpu.memory_space<vmem>>, vector<128x128xbf16>
    tpu.vector_store %arg4[%c0_3, %c0_4], %4 {strides = array<i32>} : memref<128x128xbf16, #tpu.memory_space<vmem>>, vector<128x128xbf16>,
    %c0_5 = arith.constant 0 : index
    %c0_6 = arith.constant 0 : index
    %6 = vector.load %arg3[%c0_5, %c0_6] : memref<16x16xbf16, #tpu.memory_space<vmem>>, vector<16x16xbf16>
    %cst_7 = arith.constant dense<0.000000e+00> : vector<128x16xf32>
    %7 = tpu.matmul %1, %6, %cst_7 {dimension_numbers = #tpu.dot_dimension_numbers<[1], [0], [0], [1], [0, 0, 1, 1], [], []>} : vector<128x16xbf16>, vector<16x16xbf16>, vector<128x16xf32> -> vector<128x16xf32>
    %c0_8 = arith.constant 0 : index
    %c0_9 = arith.constant 0 : index
    %8 = vector.load %arg5[%c0_8, %c0_9] : memref<128x16xf32, #tpu.memory_space<vmem>>, vector<128x16xf32>
    tpu.vector_store %arg5[%c0_8, %c0_9], %7 {strides = array<i32>} : memref<128x16xf32, #tpu.memory_space<vmem>>, vector<128x16xf32>,
    return
  }
  func.func @transform_0(%arg0: i32) -> (i32, i32) {
    %c0_i32 = arith.constant 0 : i32
    %c0_i32_0 = arith.constant 0 : i32
    return %arg0, %c0_i32 : i32, i32
  }
  func.func @transform_1(%arg0: i32) -> (i32, i32) {
    %c0_i32 = arith.constant 0 : i32
    %c0_i32_0 = arith.constant 0 : i32
    %c0_i32_1 = arith.constant 0 : i32
    return %c0_i32, %c0_i32_0 : i32, i32
  }
  func.func @transform_2(%arg0: i32) -> (i32, i32) {
    %c0_i32 = arith.constant 0 : i32
    %c0_i32_0 = arith.constant 0 : i32
    %c0_i32_1 = arith.constant 0 : i32
    return %c0_i32, %c0_i32_0 : i32, i32
  }
  func.func @transform_3(%arg0: i32) -> (i32, i32) {
    %c0_i32 = arith.constant 0 : i32
    %c0_i32_0 = arith.constant 0 : i32
    return %arg0, %c0_i32 : i32, i32
  }
  func.func @transform_4(%arg0: i32) -> (i32, i32) {
    %c0_i32 = arith.constant 0 : i32
    %c0_i32_0 = arith.constant 0 : i32
    return %arg0, %c0_i32 : i32, i32
  }
}

</mosaic_0001>

<bundles_post_ra>
// kernel: tpu_custom_call.1
= control target key start
LH: loop header
LB: loop body
LE: loop exit
PB: predicated region body
PF: predicated region fallthrough
CT: control target
= control target key end

     0   :  { %vm50_vm0 = vcmask 130048   ;;  %s747_s0 = inlined_call_operand.vmem [shape: f32[128,16], index: 0, kind: input, shape index: {}]   ;;  %s748_s1 = inlined_call_operand.vmem [shape: bf16[16,128], index: 1, kind: input, shape index: {}]   ;;  %s749_s2 = inlined_call_operand.vmem [shape: bf16[16,16], index: 2, kind: input, shape index: {}]   ;;  %s750_s3 = inlined_call_operand.hbm [shape: bf16[128,128], index: 3, kind: output, shape index: {0}]   ;;  %s751_s4 = inlined_call_operand.vmem [shape: f32[128,16], index: 4, kind: output, shape index: {1}]  }
   0x1   :  { %v547_v0 = vld [vmem:[%s748_s1] sm:$0xff]   ;;  %v19_v3 = vld [vmem:[%s747_s0 + $0x8] sm:$0xff]  ;;  %v20_v4 = vld [vmem:[%s747_s0 + $0x10] sm:$0xff] }
   0x2   :  { %v548_v1 = vld [vmem:[%s749_s2] sm:$0xff]   ;;  %508 = vmatprep.subr.bf16.mxu0 %v547_v0  ;;  %v21_v6 = vld [vmem:[%s747_s0 + $0x18] sm:$0xff]  ;;  %v23_v8 = vld [vmem:[%s747_s0 + $0x28] sm:$0xff] }
   0x3   :  { %v18_v2 = vld [vmem:[%s747_s0] sm:$0xff]  ;;  %526 = vmatprep.subr.bf16.mxu1 %v548_v1  ;;  %509 = vmatpush3.bf16.msra.mxu0 %v547_v0  ;;  %v35_v9 = vpack.c.bf16 %v21_v6, %v20_v4  ;;  %v24_v11 = vld [vmem:[%s747_s0 + $0x30] sm:$0xff]  ;;  %v25_v12 = vld [vmem:[%s747_s0 + $0x38] sm:$0xff] }
   0x4   :  { %v34_v5 = vpack.c.bf16 %v19_v3, %v18_v2  ;;  %v22_v7 = vld [vmem:[%s747_s0 + $0x20] sm:$0xff]  ;;  %527 = vmatpush3.bf16.msra.mxu1 %v548_v1 }
   0x5   :  { %v36_v10 = vpack.c.bf16 %v23_v8, %v22_v7 }
   0x6   :  { %510 = vmatprep.mubr.msk.bf16.mxu0 %vm50_vm0, %v34_v5  ;;  %528 = vmatprep.mubr.msk.bf16.mxu1 %vm50_vm0, %v34_v5 }
   0x7   :  { %511 = vmatmul.mubr.msk.bf16.vlgmr.msra.gmra.mrb[0].mxu0 %vm50_vm0, %v35_v9  ;;  %529 = vmatmul.mubr.msk.bf16.vlgmr.msra.gmra.mrb[0].mxu1 %vm50_vm0, %v35_v9 }
   0x8   :  { %514 = vmatprep.mubr.msk.bf16.mxu0 %vm50_vm0, %v36_v10 }
   0x9   :  { %10 = vsyncpa [#allocation3], 0  ;;  %532 = vmatprep.mubr.msk.bf16.mxu1 %vm50_vm0, %v36_v10  ;;  %v26_v13 = vld [vmem:[%s747_s0 + $0x40] sm:$0xff]  ;;  %v27_v14 = vld [vmem:[%s747_s0 + $0x48] sm:$0xff]  ;;  %v37_v15 = vpack.c.bf16 %v25_v12, %v24_v11  ;;  %s573_s18 = smov [#allocation2]  }
   0xa   :  { %v38_v16 = vpack.c.bf16 %v27_v14, %v26_v13  ;;  %v28_v17 = vld [vmem:[%s747_s0 + $0x50] sm:$0xff]  ;;  %v29_v18 = vld [vmem:[%s747_s0 + $0x58] sm:$0xff]  ;;  %v30_v19 = vld [vmem:[%s747_s0 + $0x60] sm:$0xff]  ;;  %s378_s19 = sshll.u32 %s573_s18, 4  ;;  %s379_s19 = int_to_ptr.vmem [resolvable:$true] %s378_s19 }
   0xb   :  { %v31_v20 = vld [vmem:[%s747_s0 + $0x68] sm:$0xff]  ;;  %v39_v21 = vpack.c.bf16 %v29_v18, %v28_v17  ;;  %v32_v23 = vld [vmem:[%s747_s0 + $0x70] sm:$0xff]  ;;  %v33_v24 = vld [vmem:[%s747_s0 + $0x78] sm:$0xff]  ;;  %s549_s2 = scalar_lea.vmem %s379_s19, 1024  ;;  %p554_p1 = scmp.lt.s32.totalorder %s379_s19, %s379_s19 }
   0xc   :  { %v40_v22 = vpack.c.bf16 %v31_v20, %v30_v19  ;;  %v41_v25 = vpack.c.bf16 %v33_v24, %v32_v23  ;;  %p550_p0 = scmp.ne.s32.totalorder %s379_s19, %s549_s2  ;;  %p555_p2 = scmp.lt.s32.totalorder %s549_s2, %s549_s2 }
   0xe   :  { %p556_p3 = por %p555_p2, %p554_p1 }
   0xf   :  { %515 = vmatmul.mubr.msk.bf16.gmra.mrb[4].mxu0 %vm50_vm0, %v37_v15  ;;  %533 = vmatmul.mubr.msk.bf16.gmra.mrb[4].mxu1 %vm50_vm0, %v37_v15 }
  0x10   :  { %518 = vmatprep.mubr.msk.bf16.mxu0 %vm50_vm0, %v38_v16  ;;  %536 = vmatprep.mubr.msk.bf16.mxu1 %vm50_vm0, %v38_v16  ;;  %p557_p4 = pnand %p556_p3, %p550_p0 }
  0x17   :  { %519 = vmatmul.mubr.msk.bf16.gmra.mrb[8].mxu0 %vm50_vm0, %v39_v21  ;;  %537 = vmatmul.mubr.msk.bf16.gmra.mrb[8].mxu1 %vm50_vm0, %v39_v21 }
  0x18   :  { %522 = vmatprep.mubr.msk.bf16.mxu0 %vm50_vm0, %v40_v22  ;;  %540 = vmatprep.mubr.msk.bf16.mxu1 %vm50_vm0, %v40_v22 }
  0x1f   :  { %523 = vmatmul.mubr.msk.bf16.gmra.mrb[12].mxu0 %vm50_vm0, %v41_v25  ;;  %541 = vmatmul.mubr.msk.bf16.gmra.mrb[12].mxu1 %vm50_vm0, %v41_v25 }
  0xda   :  { %v512_v26 = vpop.f32.mrb[0].mxu0  ;;  %v530_v27 = vpop.f32.mrb[0].mxu1 }
  0xdb   :  { %v109_v28 = vpop.f32.mrb[1].mxu0  ;;  %359 = vst.msk [vmem:[%s751_s4 + $0x10] sm:$0xff] %vm50_vm0, %v530_v27  ;;  %v294_v29 = vpop.f32.mrb[1].mxu1 }
  0xdc   :  { %v513_v30 = vpop.f32.mrb[2].mxu0  ;;  %357 = vst.msk [vmem:[%s751_s4] sm:$0xff] %vm50_vm0, %v294_v29  ;;  %v531_v32 = vpop.f32.mrb[2].mxu1 }
  0xdd   :  { %v451_v31 = vpack.c.bf16 %v513_v30, %v512_v26  ;;  %v112_v33 = vpop.f32.mrb[3].mxu0  ;;  %360 = vst.msk [vmem:[%s751_s4 + $0x18] sm:$0xff] %vm50_vm0, %v531_v32  ;;  %v297_v35 = vpop.f32.mrb[3].mxu1 }
  0xde   :  { %v446_v34 = vpack.c.bf16 %v112_v33, %v109_v28  ;;  %358 = vst.msk [vmem:[%s751_s4 + $0x8] sm:$0xff] %vm50_vm0, %v297_v35 }
  0xdf   :  { %483 = vst [vmem:[#allocation2 + $0x8] sm:$0xff] %v451_v31  }
  0xe0   :  { %447 = vst [vmem:[#allocation2] sm:$0xff] %v446_v34  }
  0xe2   :  { %v516_v36 = vpop.f32.mrb[4].mxu0  ;;  %v534_v37 = vpop.f32.mrb[4].mxu1 }
  0xe3   :  { %v125_v38 = vpop.f32.mrb[5].mxu0  ;;  %363 = vst.msk [vmem:[%s751_s4 + $0x30] sm:$0xff] %vm50_vm0, %v534_v37  ;;  %v310_v39 = vpop.f32.mrb[5].mxu1 }
  0xe4   :  { %v517_v40 = vpop.f32.mrb[6].mxu0  ;;  %361 = vst.msk [vmem:[%s751_s4 + $0x20] sm:$0xff] %vm50_vm0, %v310_v39  ;;  %v535_v42 = vpop.f32.mrb[6].mxu1 }
  0xe5   :  { %v461_v41 = vpack.c.bf16 %v517_v40, %v516_v36  ;;  %v128_v43 = vpop.f32.mrb[7].mxu0  ;;  %364 = vst.msk [vmem:[%s751_s4 + $0x38] sm:$0xff] %vm50_vm0, %v535_v42  ;;  %v313_v45 = vpop.f32.mrb[7].mxu1 }
  0xe6   :  { %v456_v44 = vpack.c.bf16 %v128_v43, %v125_v38  ;;  %362 = vst.msk [vmem:[%s751_s4 + $0x28] sm:$0xff] %vm50_vm0, %v313_v45 }
  0xe7   :  { %485 = vst [vmem:[#allocation2 + $0x18] sm:$0xff] %v461_v41  }
  0xe8   :  { %484 = vst [vmem:[#allocation2 + $0x10] sm:$0xff] %v456_v44  }
  0xea   :  { %v520_v46 = vpop.f32.mrb[8].mxu0  ;;  %v538_v47 = vpop.f32.mrb[8].mxu1 }
  0xeb   :  { %v141_v48 = vpop.f32.mrb[9].mxu0  ;;  %367 = vst.msk [vmem:[%s751_s4 + $0x50] sm:$0xff] %vm50_vm0, %v538_v47  ;;  %v326_v49 = vpop.f32.mrb[9].mxu1 }
  0xec   :  { %v521_v50 = vpop.f32.mrb[10].mxu0  ;;  %365 = vst.msk [vmem:[%s751_s4 + $0x40] sm:$0xff] %vm50_vm0, %v326_v49  ;;  %v539_v52 = vpop.f32.mrb[10].mxu1 }
  0xed   :  { %v471_v51 = vpack.c.bf16 %v521_v50, %v520_v46  ;;  %v144_v53 = vpop.f32.mrb[11].mxu0  ;;  %368 = vst.msk [vmem:[%s751_s4 + $0x58] sm:$0xff] %vm50_vm0, %v539_v52  ;;  %v329_v55 = vpop.f32.mrb[11].mxu1 }
  0xee   :  { %v466_v54 = vpack.c.bf16 %v144_v53, %v141_v48  ;;  %366 = vst.msk [vmem:[%s751_s4 + $0x48] sm:$0xff] %vm50_vm0, %v329_v55 }
  0xef   :  { %487 = vst [vmem:[#allocation2 + $0x28] sm:$0xff] %v471_v51  }
  0xf0   :  { %486 = vst [vmem:[#allocation2 + $0x20] sm:$0xff] %v466_v54  }
  0xf2   :  { %v524_v56 = vpop.f32.mrb[12].mxu0  ;;  %v542_v57 = vpop.f32.mrb[12].mxu1 }
  0xf3   :  { %v157_v58 = vpop.f32.mrb[13].mxu0  ;;  %371 = vst.msk [vmem:[%s751_s4 + $0x70] sm:$0xff] %vm50_vm0, %v542_v57  ;;  %v342_v59 = vpop.f32.mrb[13].mxu1 }
  0xf4   :  { %v525_v60 = vpop.f32.mrb[14].mxu0  ;;  %369 = vst.msk [vmem:[%s751_s4 + $0x60] sm:$0xff] %vm50_vm0, %v342_v59  ;;  %v543_v62 = vpop.f32.mrb[14].mxu1 }
  0xf5   :  { %v481_v61 = vpack.c.bf16 %v525_v60, %v524_v56  ;;  %v160_v63 = vpop.f32.mrb[15].mxu0  ;;  %372 = vst.msk [vmem:[%s751_s4 + $0x78] sm:$0xff] %vm50_vm0, %v543_v62  ;;  %v345_v1 = vpop.f32.mrb[15].mxu1 }
  0xf6   :  { %v476_v0 = vpack.c.bf16 %v160_v63, %v157_v58  ;;  %370 = vst.msk [vmem:[%s751_s4 + $0x68] sm:$0xff] %vm50_vm0, %v345_v1 }
  0xf7   :  { %489 = vst [vmem:[#allocation2 + $0x38] sm:$0xff] %v481_v61  }
  0xf8   :  { %488 = vst [vmem:[#allocation2 + $0x30] sm:$0xff] %v476_v0  }
  0xf9   :  { %560 = shalt.err (!%p557_p4)
}
  0xfa   :  { %s561_s28 = scalar_lea.hbm %s750_s3, 1024 }
  0xfb   :  { %p562_p5 = scmp.ne.s32.totalorder %s750_s3, %s561_s28  ;;  %p565_p6 = scmp.lt.u32.totalorder %s561_s28, %s750_s3 }
  0xfd   :  { %p567_p7 = pnand %p565_p6, %p562_p5 }
  0xff   :  { %570 = shalt.err (!%p567_p7)
}
 0x100   :  { %s574_s4 = smov 64   ;;  %s575_s7 = smov 4  }
 0x101   :  { %384 = dma.vmem_to_hbm [thread:$0]  %s379_s19, 1024, %s750_s3, [#allocation3], %s574_s4, %s574_s4, %s575_s7  }
 0x102   :  { %571 = dma.done.wait [#allocation3], 1024  }
 0x103   :  { %572 = vsyncadd [#allocation3], 4294966272 }
 0x104   :  { %392 = vsyncpa [#allocation3], 1 }

</bundles_post_ra>
